<compile_context>
chip_gen: v5e
topology: v5e:2x2
jax: 0.10.0
libtpu: 0.0.40
codegen_flags: <defaults>
</compile_context>

<pallas_src>
import functools

import jax
import jax.numpy as jnp
from jax.experimental import pallas as pl
from jax.experimental.pallas import tpu as pltpu


def _nearest_upsample_kernel(x_ref, rw_ref, o_ref, *, s, ws):
    # x_ref : (TR, W)        block of flattened (N*C*H, W) rows
    # rw_ref: (W, Ws)        0/1 column-replication matrix (Ws = W*s)
    # o_ref : (TR, s*Ws)     each output row = s concatenated copies of the
    #                        column-upsampled input row (== s consecutive
    #                        output image rows laid out contiguously)
    upw = jnp.dot(x_ref[...], rw_ref[...],
                  preferred_element_type=jnp.float32)          # (TR, Ws)
    upw = upw.astype(o_ref.dtype)
    for j in range(s):                                         # row replication = pure copies
        o_ref[:, j * ws:(j + 1) * ws] = upw


def _pick_row_block(total_rows, w, s, itemsize, budget_bytes=12 << 20):
    """Rows of the flattened (N*C*H, W) input processed per grid step."""
    # Double-buffered input row + output row bytes per flattened row.
    per_row = 2 * (w + s * s * w) * itemsize
    cap = max(8, (budget_bytes // per_row) // 8 * 8)
    tr = min(total_rows, cap)
    # Prefer >= 2 balanced grid steps so both TensorCores on v7x get work.
    if tr >= total_rows and total_rows >= 16:
        tr = ((total_rows + 1) // 2 + 7) // 8 * 8
    return max(8, min(tr, total_rows))


def resolution_scaling_layer(x, scale_factor=2):
    """Nearest-neighbor upsample of an NCHW tensor by `scale_factor`.

    Matches torch.nn.functional.interpolate(x, scale_factor, mode='nearest').
    Intended for float feature maps (f32 / bf16), as in PGGAN.
    """
    N, C, H, W = x.shape
    s = int(scale_factor)
    Ws = W * s
    R = N * C * H

    # Flatten batch/channel/height into one big row axis (contiguous reshape).
    x2 = x.reshape(R, W)

    # 0/1 column-replication matrix: (x @ rw)[:, q] = x[:, q // s]  (exact).
    rw = (jnp.arange(W)[:, None] == (jnp.arange(Ws)[None, :] // s)).astype(x.dtype)

    itemsize = jnp.dtype(x.dtype).itemsize
    TR = _pick_row_block(R, W, s, itemsize)
    grid = (pl.cdiv(R, TR),)

    out2 = pl.pallas_call(
        functools.partial(_nearest_upsample_kernel, s=s, ws=Ws),
        out_shape=jax.ShapeDtypeStruct((R, s * Ws), x.dtype),
        grid_spec=pltpu.PrefetchScalarGridSpec(
            num_scalar_prefetch=0,
            grid=grid,
            in_specs=[
                pl.BlockSpec((TR, W), lambda i: (i, 0)),      # big row block of x
                pl.BlockSpec((W, Ws), lambda i: (0, 0)),      # shared small rw
            ],
            out_specs=pl.BlockSpec((TR, s * Ws), lambda i: (i, 0)),  # lane-dense out block
        ),
        compiler_params=pltpu.CompilerParams(
            dimension_semantics=("parallel",),
            vmem_limit_bytes=48 * 1024 * 1024,
        ),
    )(x2, rw)

    # (N*C*H, s*s*W) -> (N, C, H*s, W*s) is a free contiguous reshape:
    # flat order is (nc, h, a, w, b)  ==  (nc, h*s + a, w*s + b).
    return out2.reshape(N, C, H * s, W * s)


if __name__ == "__main__":
    key = jax.random.PRNGKey(0)
    N, C, H, W = 2, 4, 16, 16
    x = jax.random.normal(key, (N, C, H, W), dtype=jnp.float32)

    out = resolution_scaling_layer(x, scale_factor=2)
    out = jax.block_until_ready(out)

    # Reference: plain-JAX nearest-neighbor upsample (same semantics as
    # F.interpolate(mode='nearest', scale_factor=2) on NCHW).
    ref = jnp.repeat(jnp.repeat(x, 2, axis=2), 2, axis=3)
    assert out.shape == (N, C, 2 * H, 2 * W)
    assert out.dtype == x.dtype
    assert jnp.allclose(out, ref), "mismatch vs reference nearest upsample"

    print("KERNEL_OK")
</pallas_src>

<mosaic_0001>
module attributes {stable_mosaic.version = 11 : i64} {
  func.func @_nearest_upsample_kernel(%arg0: i32, %arg1: memref<64x16xf32, #tpu.memory_space<vmem>>, %arg2: memref<16x32xf32, #tpu.memory_space<vmem>>, %arg3: memref<64x64xf32, #tpu.memory_space<vmem>>) attributes {dimension_semantics = [#tpu.dimension_semantics<parallel>], iteration_bounds = array<i64: 2>, scalar_prefetch = 0 : i64, scratch_operands = 0 : i64, tpu.core_type = #tpu.core_type<tc>, window_params = [{transform_indices = @transform_0, window_bounds = array<i64: 64, 16>}, {pipeline_mode = #tpu.pipeline_mode<synchronous>, transform_indices = @transform_1, window_bounds = array<i64: 16, 32>}, {transform_indices = @transform_2, window_bounds = array<i64: 64, 64>}]} {
    %c0 = arith.constant 0 : index
    %c0_0 = arith.constant 0 : index
    %0 = vector.load %arg1[%c0, %c0_0] : memref<64x16xf32, #tpu.memory_space<vmem>>, vector<64x16xf32>
    %c0_1 = arith.constant 0 : index
    %c0_2 = arith.constant 0 : index
    %1 = vector.load %arg2[%c0_1, %c0_2] : memref<16x32xf32, #tpu.memory_space<vmem>>, vector<16x32xf32>
    %cst = arith.constant dense<0.000000e+00> : vector<64x32xf32>
    %2 = tpu.matmul %0, %1, %cst {dimension_numbers = #tpu.dot_dimension_numbers<[1], [0], [0], [1], [0, 0, 1, 1], [], []>} : vector<64x16xf32>, vector<16x32xf32>, vector<64x32xf32> -> vector<64x32xf32>
    %c0_3 = arith.constant 0 : index
    %c0_4 = arith.constant 0 : index
    %3 = vector.load %arg3[%c0_3, %c0_4] : memref<64x64xf32, #tpu.memory_space<vmem>>, vector<64x32xf32>
    tpu.vector_store %arg3[%c0_3, %c0_4], %2 {strides = array<i32>} : memref<64x64xf32, #tpu.memory_space<vmem>>, vector<64x32xf32>,
    %c0_5 = arith.constant 0 : index
    %c32 = arith.constant 32 : index
    %4 = vector.load %arg3[%c0_5, %c32] : memref<64x64xf32, #tpu.memory_space<vmem>>, vector<64x32xf32>
    tpu.vector_store %arg3[%c0_5, %c32], %2 {strides = array<i32>} : memref<64x64xf32, #tpu.memory_space<vmem>>, vector<64x32xf32>,
    return
  }
  func.func @transform_0(%arg0: i32) -> (i32, i32) {
    %c0_i32 = arith.constant 0 : i32
    %c0_i32_0 = arith.constant 0 : i32
    return %arg0, %c0_i32 : i32, i32
  }
  func.func @transform_1(%arg0: i32) -> (i32, i32) {
    %c0_i32 = arith.constant 0 : i32
    %c0_i32_0 = arith.constant 0 : i32
    %c0_i32_1 = arith.constant 0 : i32
    return %c0_i32, %c0_i32_0 : i32, i32
  }
  func.func @transform_2(%arg0: i32) -> (i32, i32) {
    %c0_i32 = arith.constant 0 : i32
    %c0_i32_0 = arith.constant 0 : i32
    return %arg0, %c0_i32 : i32, i32
  }
}

</mosaic_0001>

<bundles_post_ra>
// kernel: tpu_custom_call.1
= control target key start
LH: loop header
LB: loop body
LE: loop exit
PB: predicated region body
PF: predicated region fallthrough
CT: control target
= control target key end

     0   :  { %s387_s9 = smov 0   ;;  %s452_s0 = inlined_call_operand.vmem [shape: f32[128,16], index: 0, kind: input, shape index: {}]   ;;  %s453_s1 = inlined_call_operand.vmem [shape: f32[16,32], index: 1, kind: input, shape index: {}]   ;;  %s454_s2 = inlined_call_operand.vmem [shape: f32[128,64], index: 2, kind: output, shape index: {}]  }
   0x1 LB: > { %s329_s10 = sadd.s32 4294967295, %s369_s9   ;;  %p333_p0 = scmp.ge.s32.totalorder %s369_s9, 1  ;;  %s369_s9 = sphi %s387_s9, %s12_s9  }
   0x2   : > { %p113_p1 = scmp.lt.s32.totalorder %s369_s9, 3 }
   0x4   : > { %p114_p2 = pnand %p333_p0, %p113_p1 }
   0x5   : > { %s334_s15 = sshll.u32 (!%p114_p2), %s329_s10, 3  ;;  %s371_s23 = smov (!%p114_p2), 32  }
   0x6   : > { %117 = sbr.rel (%p114_p2) target bundleno = 275 (0x113), region = 28  ;;  %p136_p3 = scmp.lt.s32.totalorder (!%p114_p2), %s334_s15, 15 }
   0xb   : > { %v156_v0 = vld [vmem:[%s453_s1 + $0x8] sm:$0xff]  ;;  %v155_v1 = vld [vmem:[%s453_s1] sm:$0xff]  ;;  %s456_s15 = smov (!%p136_p3, %s334_s15), 15  ;;  %vm157_vm0 = vcmask 130048   ;;  %vm223_vm1 = vcmask 261120   ;;  %vm264_vm2 = vcmask 523520  }
   0xc   : > { %196 = vmatpush.msra.mxu0 %v156_v0  ;;  %348 = vmatpush.msra.mxu1 %v156_v0  ;;  %s335_s16 = sshll.u32 %s456_s15, 3 }
   0xd   : > { %350 = vmatpush.msra.mxu3 %v156_v0  ;;  %349 = vmatpush.msra.mxu2 %v156_v0  ;;  %s139_s19 = scalar_lea.vmem %s452_s0, %s335_s16  ;;  %s415_s22 = scalar_lea.vmem %s454_s2, %s335_s16 }
   0xe   : > { %197 = vmatpush.msra.mxu0 %v155_v1  ;;  %351 = vmatpush.msra.mxu1 %v155_v1  ;;  %v147_v2 = vld [vmem:[%s139_s19] sm:$0xff]  ;;  %v149_v3 = vld [vmem:[%s139_s19 + $0x10] sm:$0xff]  ;;  %v148_v6 = vld [vmem:[%s139_s19 + $0x8] sm:$0xff] }
   0xf   : > { %353 = vmatpush.msra.mxu3 %v155_v1  ;;  %352 = vmatpush.msra.mxu2 %v155_v1  ;;  %v153_v4 = vld [vmem:[%s139_s19 + $0x30] sm:$0xff]  ;;  %v151_v5 = vld [vmem:[%s139_s19 + $0x20] sm:$0xff]  ;;  %v150_v7 = vld [vmem:[%s139_s19 + $0x18] sm:$0xff] }
  0x10   : > { %338 = vmatmul.msk.f32.vlgmr.msra.gmra.mxu0 %vm157_vm0, %v147_v2  ;;  %340 = vmatmul.msk.f32.vlgmr.msra.gmra.mxu1 %vm157_vm0, %v149_v3  ;;  %v154_v8 = vld [vmem:[%s139_s19 + $0x38] sm:$0xff]  ;;  %v152_v9 = vld [vmem:[%s139_s19 + $0x28] sm:$0xff] }
  0x11   : > { %344 = vmatmul.msk.f32.vlgmr.msra.gmra.mxu3 %vm157_vm0, %v153_v4  ;;  %342 = vmatmul.msk.f32.vlgmr.msra.gmra.mxu2 %vm157_vm0, %v151_v5 }
  0x18   : > { %339 = vmatmul.msk.f32.gmra.mxu0 %vm157_vm0, %v148_v6  ;;  %341 = vmatmul.msk.f32.gmra.mxu1 %vm157_vm0, %v150_v7 }
  0x19   : > { %345 = vmatmul.msk.f32.gmra.mxu3 %vm157_vm0, %v154_v8  ;;  %343 = vmatmul.msk.f32.gmra.mxu2 %vm157_vm0, %v152_v9 }
  0x8d   : > { %v199_v10 = vpop.f32.mrf.mxu0  ;;  %v205_v11 = vpop.f32.mrf.mxu1 }
  0x8e   : > { %224 = vst.msk [vmem:[%s415_s22] sm:$0xff] %vm223_vm1, %v199_v10  ;;  %244 = vrot.lane.b32.xlu1 %v205_v11, %s371_s23  ;;  %240 = vrot.lane.b32.xlu0 %v199_v10, %s371_s23 }
  0x8f   : > { %226 = vst.msk [vmem:[%s415_s22 + $0x10] sm:$0xff] %vm223_vm1, %v205_v11 }
  0x94   : > { %v217_v12 = vpop.f32.mrf.mxu3  ;;  %v211_v15 = vpop.f32.mrf.mxu2 }
  0x95   : > { %v202_v13 = vpop.f32.mrf.mxu0  ;;  %v208_v14 = vpop.f32.mrf.mxu1  ;;  %230 = vst.msk [vmem:[%s415_s22 + $0x30] sm:$0xff] %vm223_vm1, %v217_v12  ;;  %248 = vrot.lane.b32.xlu2 %v211_v15, %s371_s23 }
  0x96   : > { %225 = vst.msk [vmem:[%s415_s22 + $0x8] sm:$0xff] %vm223_vm1, %v202_v13  ;;  %246 = vrot.lane.b32.xlu1 %v208_v14, %s371_s23  ;;  %242 = vrot.lane.b32.xlu0 %v202_v13, %s371_s23 }
  0x97   : > { %227 = vst.msk [vmem:[%s415_s22 + $0x18] sm:$0xff] %vm223_vm1, %v208_v14 }
  0x98   : > { %228 = vst.msk [vmem:[%s415_s22 + $0x20] sm:$0xff] %vm223_vm1, %v211_v15 }
  0x9c   : > { %v220_v16 = vpop.f32.mrf.mxu3  ;;  %v214_v17 = vpop.f32.mrf.mxu2 }
  0x9d   : > { %231 = vst.msk [vmem:[%s415_s22 + $0x38] sm:$0xff] %vm223_vm1, %v220_v16  ;;  %250 = vrot.lane.b32.xlu2 %v214_v17, %s371_s23 }
  0x9e   : > { %254 = vrot.lane.b32.xlu1 %v220_v16, %s371_s23  ;;  %252 = vrot.lane.b32.xlu0 %v217_v12, %s371_s23  ;;  %229 = vst.msk [vmem:[%s415_s22 + $0x28] sm:$0xff] %vm223_vm1, %v214_v17 }
  0xef   : > { %v249_v18 = vpop.permute.xlu2 %248 }
  0xf0   : > { %269 = vst.msk [vmem:[%s415_s22 + $0x20] sm:$0xff] %vm264_vm2, %v249_v18 }
  0xf7   : > { %v251_v19 = vpop.permute.xlu2 %250 }
  0xf8   : > { %270 = vst.msk [vmem:[%s415_s22 + $0x28] sm:$0xff] %vm264_vm2, %v251_v19 }
 0x100   : > { %v245_v20 = vpop.permute.xlu1 %244  ;;  %v241_v21 = vpop.permute.xlu0 %240 }
 0x101   : > { %267 = vst.msk [vmem:[%s415_s22 + $0x10] sm:$0xff] %vm264_vm2, %v245_v20 }
 0x102   : > { %265 = vst.msk [vmem:[%s415_s22] sm:$0xff] %vm264_vm2, %v241_v21 }
 0x108   : > { %v247_v22 = vpop.permute.xlu1 %246  ;;  %v243_v23 = vpop.permute.xlu0 %242 }
 0x109   : > { %268 = vst.msk [vmem:[%s415_s22 + $0x18] sm:$0xff] %vm264_vm2, %v247_v22 }
 0x10a   : > { %266 = vst.msk [vmem:[%s415_s22 + $0x8] sm:$0xff] %vm264_vm2, %v243_v23 }
 0x110   : > { %v255_v24 = vpop.permute.xlu1 %254  ;;  %v253_v25 = vpop.permute.xlu0 %252 }
 0x111   : > { %272 = vst.msk [vmem:[%s415_s22 + $0x38] sm:$0xff] %vm264_vm2, %v255_v24 }
 0x112   : > { %271 = vst.msk [vmem:[%s415_s22 + $0x30] sm:$0xff] %vm264_vm2, %v253_v25 }
 0x113 PF: > { %s12_s9 = sadd.s32 1, %s369_s9  }
 0x114   : > { %p9_p4 = scmp.ge.s32.totalorder %s12_s9, 4  }
 0x116   :  { %11 = sbr.rel (!%p9_p4) target bundleno = 1 (0x1), region = 58 }

</bundles_post_ra>
